<compile_context>
chip_gen: v6e
topology: v6e:2x2x1
jax: 0.10.0
libtpu: 0.0.40
codegen_flags: <defaults>
</compile_context>

<pallas_src>
import functools
import math

import jax
import jax.numpy as jnp
from jax.experimental import pallas as pl
from jax.experimental.pallas import tpu as pltpu


def _round_up(n, m):
    return ((n + m - 1) // m) * m


def _default_tn(out_features):
    """Lane-dense output tile; keep >=2 column tiles when O allows (v7x 2 TCs)."""
    n128 = -(-out_features // 128)
    if n128 <= 1:
        return 128
    return 128 * min(4, (n128 + 1) // 2)      # <=512, >=2 j iterations


def _default_tk(in_features):
    """Collapse the K axis when the (padded) feature dim fits one tile."""
    d128 = _round_up(in_features, 128)
    return d128 if d128 <= 2048 else 1024


def _make_kernel(emit_both: bool, single_k: bool):
    """Tiled cosine-linear kernel. 1 or 2 outputs; optional K-axis grid."""

    def _finalize(acc, inv_xn, inv_wn, sigma, out_wo_ref, out_ws_ref):
        # Sequential scaling: no (tm, tn) outer-product temporary.
        cos = (acc * inv_xn) * inv_wn
        if emit_both:
            out_wo_ref[...] = cos.astype(out_wo_ref.dtype)
        out_ws_ref[...] = (sigma * cos).astype(out_ws_ref.dtype)

    def _dot(x, w):
        # Contract the LAST dim of both operands (no transpose through XLU);
        # bf16 operands feed the MXU directly, f32 accumulation.
        return jax.lax.dot_general(
            x, w,
            dimension_numbers=(((1,), (1,)), ((), ())),
            preferred_element_type=jnp.float32)

    if single_k:
        def kernel(sigma_ref, inv_xn_ref, inv_wn_ref, x_ref, w_ref, *out_refs):
            if emit_both:
                out_wo_ref, out_ws_ref = out_refs
            else:
                (out_ws_ref,) = out_refs
                out_wo_ref = None
            acc = _dot(x_ref[...], w_ref[...])
            _finalize(acc, inv_xn_ref[...], inv_wn_ref[...], sigma_ref[0],
                      out_wo_ref, out_ws_ref)
        return kernel

    def kernel(sigma_ref, inv_xn_ref, inv_wn_ref, x_ref, w_ref, *refs):
        if emit_both:
            out_wo_ref, out_ws_ref, acc_ref = refs
        else:
            out_ws_ref, acc_ref = refs
            out_wo_ref = None

        k = pl.program_id(2)

        @pl.when(k == 0)
        def _init():
            acc_ref[...] = jnp.zeros_like(acc_ref)

        acc_ref[...] += _dot(x_ref[...], w_ref[...])

        @pl.when(k == pl.num_programs(2) - 1)
        def _fin():
            _finalize(acc_ref[...], inv_xn_ref[...], inv_wn_ref[...],
                      sigma_ref[0], out_wo_ref, out_ws_ref)

    return kernel


@functools.partial(
    jax.jit,
    static_argnames=("emit_both", "tm", "tn", "tk", "out_features", "out_dtype"))
def _cosine_linear_padded(x, w_padded, inv_wn_padded, sigma_arr, *,
                          emit_both, tm, tn, tk, out_features, out_dtype):
    """Runs the kernel given pre-padded bf16 weights and (1, Op) inv_wn."""
    B, D = x.shape
    Op, Dp = w_padded.shape
    assert Op % tn == 0 and Dp % tk == 0 and D <= Dp

    if tm is None:
        tm = min(128, _round_up(B, 16))       # bf16 sublane packing
    assert tm % 8 == 0 and tn % 128 == 0 and tk % 128 == 0
    Bp = _round_up(B, tm)

    if out_dtype is None:
        out_dtype = x.dtype

    # x row-norm reciprocals hoisted out of the kernel (f32 for accuracy);
    # 1/max(||row||, 1e-12) == rsqrt(max(sumsq, 1e-24)).
    xf = x.astype(jnp.float32)
    inv_xn = jax.lax.rsqrt(
        jnp.maximum(jnp.sum(xf * xf, axis=1, keepdims=True), jnp.float32(1e-24)))

    xb = x.astype(jnp.bfloat16)
    if Bp != B or Dp != D:
        xb = jnp.pad(xb, ((0, Bp - B), (0, Dp - D)))
        inv_xn = jnp.pad(inv_xn, ((0, Bp - B), (0, 0)))   # padded rows -> 0 scale

    single_k = (Dp == tk)

    if single_k:
        grid = (Bp // tm, Op // tn)
        in_specs = [
            pl.BlockSpec(memory_space=pltpu.MemorySpace.SMEM),        # sigma
            pl.BlockSpec((tm, 1), lambda i, j: (i, 0)),               # inv_xn
            pl.BlockSpec((1, tn), lambda i, j: (0, j)),               # inv_wn
            pl.BlockSpec((tm, tk), lambda i, j: (i, 0)),              # x
            pl.BlockSpec((tn, tk), lambda i, j: (j, 0)),              # weight
        ]
        out_block = pl.BlockSpec((tm, tn), lambda i, j: (i, j))
        scratch = []
        semantics = ("parallel", "parallel")
    else:
        grid = (Bp // tm, Op // tn, Dp // tk)
        in_specs = [
            pl.BlockSpec(memory_space=pltpu.MemorySpace.SMEM),        # sigma
            pl.BlockSpec((tm, 1), lambda i, j, k: (i, 0)),            # inv_xn
            pl.BlockSpec((1, tn), lambda i, j, k: (0, j)),            # inv_wn
            pl.BlockSpec((tm, tk), lambda i, j, k: (i, k)),           # x
            pl.BlockSpec((tn, tk), lambda i, j, k: (j, k)),           # weight
        ]
        out_block = pl.BlockSpec((tm, tn), lambda i, j, k: (i, j))
        scratch = [pltpu.VMEM((tm, tn), jnp.float32)]                 # f32 acc
        semantics = ("parallel", "parallel", "arbitrary")

    if emit_both:
        out_shape = (jax.ShapeDtypeStruct((Bp, Op), out_dtype),
                     jax.ShapeDtypeStruct((Bp, Op), out_dtype))
        out_specs = (out_block, out_block)
    else:
        out_shape = jax.ShapeDtypeStruct((Bp, Op), out_dtype)
        out_specs = out_block

    result = pl.pallas_call(
        _make_kernel(emit_both, single_k),
        out_shape=out_shape,
        grid_spec=pltpu.PrefetchScalarGridSpec(
            num_scalar_prefetch=0,
            grid=grid,
            in_specs=in_specs,
            out_specs=out_specs,
            scratch_shapes=scratch),
        compiler_params=pltpu.CompilerParams(
            dimension_semantics=semantics,
            vmem_limit_bytes=48 * 1024 * 1024),
    )(sigma_arr, inv_xn, inv_wn_padded, xb, w_padded)

    O = out_features
    if emit_both:
        out_wo, out_ws = result
        return out_wo[:B, :O], out_ws[:B, :O]
    return result[:B, :O]


def _prepare_weight(weight, tn, tk):
    """Pad weight to bf16 (Op, Dp) and compute f32 row-norm reciprocals (1, Op)."""
    O, D = weight.shape
    Op, Dp = _round_up(O, tn), _round_up(D, tk)
    wf = weight.astype(jnp.float32)
    inv_wn = jax.lax.rsqrt(
        jnp.maximum(jnp.sum(wf * wf, axis=1, keepdims=True),
                    jnp.float32(1e-24))).reshape(1, O)
    wp = weight.astype(jnp.bfloat16)
    if Op != O or Dp != D:
        wp = jnp.pad(wp, ((0, Op - O), (0, Dp - D)))
        inv_wn = jnp.pad(inv_wn, ((0, 0), (0, Op - O)))   # padded cols -> 0 scale
    return wp, inv_wn


def cosine_linear_pallas(x, weight, sigma, *, emit_both=True,
                         tm=None, tn=None, tk=None, out_dtype=None):
    """Convenience entry point (no caching). Returns (wo, ws) or ws."""
    O, D = weight.shape
    assert x.shape[1] == D, "in_features mismatch"
    if tn is None:
        tn = _default_tn(O)
    if tk is None:
        tk = _default_tk(D)
    wp, inv_wn = _prepare_weight(weight, tn, tk)
    sigma_arr = jnp.asarray(sigma, dtype=jnp.float32).reshape((1,))
    return _cosine_linear_padded(x, wp, inv_wn, sigma_arr,
                                 emit_both=emit_both, tm=tm, tn=tn, tk=tk,
                                 out_features=O, out_dtype=out_dtype)


class CosineLinearJAX:
    """Mirrors the PyTorch module; caches padded weights / norms for reuse."""

    def __init__(self, in_features, out_features, sigma=True, key=None):
        self.in_features = in_features
        self.out_features = out_features
        if key is None:
            key = jax.random.PRNGKey(0)
        stdv = 1.0 / math.sqrt(in_features)
        # reset_parameters(): weight ~ U(-stdv, stdv); sigma = 1.0
        self.weight = jax.random.uniform(
            key, (out_features, in_features), dtype=jnp.float32,
            minval=-stdv, maxval=stdv)
        self.sigma = jnp.float32(1.0) if sigma else None
        self.training = False
        self._tn = _default_tn(out_features)
        self._tk = _default_tk(in_features)
        self._cache = None   # (w_padded_bf16, inv_wn_padded)

    def _prepared(self):
        if self._cache is None:
            self._cache = _prepare_weight(self.weight, self._tn, self._tk)
        return self._cache

    def __call__(self, x):
        wp, inv_wn = self._prepared()
        sigma_val = self.sigma if self.sigma is not None else jnp.float32(1.0)
        sigma_arr = jnp.asarray(sigma_val, dtype=jnp.float32).reshape((1,))
        if self.training:
            out_wo, out_ws = _cosine_linear_padded(
                x, wp, inv_wn, sigma_arr, emit_both=True, tm=None,
                tn=self._tn, tk=self._tk, out_features=self.out_features,
                out_dtype=None)
            out_s = out_ws if self.sigma is not None else out_wo
            return {"wsigma": out_s, "wosigma": out_wo}
        # Eval: only the sigma-scaled output is needed -> single-output kernel.
        return _cosine_linear_padded(
            x, wp, inv_wn, sigma_arr, emit_both=False, tm=None,
            tn=self._tn, tk=self._tk, out_features=self.out_features,
            out_dtype=None)


def _reference(x, weight, sigma):
    eps = 1e-12
    xn = x / jnp.maximum(jnp.linalg.norm(x, axis=1, keepdims=True), eps)
    wn = weight / jnp.maximum(jnp.linalg.norm(weight, axis=1, keepdims=True), eps)
    out = xn @ wn.T
    return out, sigma * out


if __name__ == "__main__":
    key = jax.random.PRNGKey(0)
    k_x, k_w, k_x2, k_w2 = jax.random.split(key, 4)

    # bf16 MXU operands => ~1e-3-level rounding vs f32 reference.
    ATOL = 2e-2

    # Small shapes consistent with the module.
    batch, in_features, out_features = 8, 32, 16
    x = jax.random.normal(k_x, (batch, in_features), dtype=jnp.float32)

    layer = CosineLinearJAX(in_features, out_features, sigma=True, key=k_w)
    layer.sigma = jnp.float32(2.5)   # exercise the sigma path

    # eval mode (single-K, single-output kernel)
    out_eval = jax.block_until_ready(layer(x))

    # training mode (two outputs)
    layer.training = True
    out_train = jax.tree_util.tree_map(jax.block_until_ready, layer(x))

    ref_wo, ref_w = _reference(x, layer.weight, layer.sigma)
    assert jnp.allclose(out_eval, ref_w, atol=ATOL, rtol=ATOL)
    assert jnp.allclose(out_train["wosigma"], ref_wo, atol=ATOL, rtol=ATOL)
    assert jnp.allclose(out_train["wsigma"], ref_w, atol=ATOL, rtol=ATOL)

    # Second case exercising multi-tile B/O/K accumulation + padding.
    B2, D2, O2 = 48, 320, 200
    x2 = jax.random.normal(k_x2, (B2, D2), dtype=jnp.float32)
    w2 = jax.random.uniform(k_w2, (O2, D2), dtype=jnp.float32,
                            minval=-0.1, maxval=0.1)
    sig2 = jnp.float32(3.0)
    wo2, ws2 = cosine_linear_pallas(x2, w2, sig2, emit_both=True,
                                    tm=16, tn=128, tk=128)
    wo2 = jax.block_until_ready(wo2)
    ws2 = jax.block_until_ready(ws2)
    r_wo2, r_w2 = _reference(x2, w2, sig2)
    assert jnp.allclose(wo2, r_wo2, atol=ATOL, rtol=ATOL)
    assert jnp.allclose(ws2, r_w2, atol=ATOL, rtol=ATOL)

    print("KERNEL_OK")
</pallas_src>

<mosaic_0001>
module attributes {stable_mosaic.version = 11 : i64} {
  func.func @kernel(%arg0: i32, %arg1: i32, %arg2: memref<1xf32, #tpu.memory_space<smem>>, %arg3: memref<16x1xf32, #tpu.memory_space<vmem>>, %arg4: memref<1x128xf32, #tpu.memory_space<vmem>>, %arg5: memref<16x128xbf16, #tpu.memory_space<vmem>>, %arg6: memref<128x128xbf16, #tpu.memory_space<vmem>>, %arg7: memref<16x128xf32, #tpu.memory_space<vmem>>) attributes {dimension_semantics = [#tpu.dimension_semantics<parallel>, #tpu.dimension_semantics<parallel>], iteration_bounds = array<i64: 1, 1>, scalar_prefetch = 0 : i64, scratch_operands = 0 : i64, tpu.core_type = #tpu.core_type<tc>, window_params = [{transform_indices = @transform_0, window_bounds = array<i64: 1>}, {transform_indices = @transform_1, window_bounds = array<i64: 16, 1>}, {transform_indices = @transform_2, window_bounds = array<i64: 1, 128>}, {transform_indices = @transform_3, window_bounds = array<i64: 16, 128>}, {transform_indices = @transform_4, window_bounds = array<i64: 128, 128>}, {transform_indices = @transform_5, window_bounds = array<i64: 16, 128>}]} {
    %c0 = arith.constant 0 : index
    %c0_0 = arith.constant 0 : index
    %0 = vector.load %arg5[%c0, %c0_0] : memref<16x128xbf16, #tpu.memory_space<vmem>>, vector<16x128xbf16>
    %c0_1 = arith.constant 0 : index
    %c0_2 = arith.constant 0 : index
    %1 = vector.load %arg6[%c0_1, %c0_2] : memref<128x128xbf16, #tpu.memory_space<vmem>>, vector<128x128xbf16>
    %cst = arith.constant dense<0.000000e+00> : vector<16x128xf32>
    %2 = tpu.matmul %0, %1, %cst {dimension_numbers = #tpu.dot_dimension_numbers<[1], [1], [0], [0], [0, 0, 1, 0], [], []>} : vector<16x128xbf16>, vector<128x128xbf16>, vector<16x128xf32> -> vector<16x128xf32>
    %c0_3 = arith.constant 0 : index
    %c0_4 = arith.constant 0 : index
    %3 = vector.load %arg3[%c0_3, %c0_4] : memref<16x1xf32, #tpu.memory_space<vmem>>, vector<16x1xf32>
    %c0_5 = arith.constant 0 : index
    %c0_6 = arith.constant 0 : index
    %4 = vector.load %arg4[%c0_5, %c0_6] : memref<1x128xf32, #tpu.memory_space<vmem>>, vector<1x128xf32>
    %c0_7 = arith.constant 0 : index
    %5 = memref.load %arg2[%c0_7] : memref<1xf32, #tpu.memory_space<smem>>
    %6 = vector.broadcast %3 : vector<16x1xf32> to vector<16x128xf32>
    %7 = arith.mulf %2, %6 : vector<16x128xf32>
    %8 = vector.broadcast %4 : vector<1x128xf32> to vector<16x128xf32>
    %9 = arith.mulf %7, %8 : vector<16x128xf32>
    %10 = vector.broadcast %5 : f32 to vector<16x128xf32>
    %11 = arith.mulf %10, %9 : vector<16x128xf32>
    %c0_8 = arith.constant 0 : index
    %c0_9 = arith.constant 0 : index
    %12 = vector.load %arg7[%c0_8, %c0_9] : memref<16x128xf32, #tpu.memory_space<vmem>>, vector<16x128xf32>
    tpu.vector_store %arg7[%c0_8, %c0_9], %11 {strides = array<i32>} : memref<16x128xf32, #tpu.memory_space<vmem>>, vector<16x128xf32>,
    return
  }
  func.func @transform_0(%arg0: i32, %arg1: i32) -> i32 {
    %c0_i32 = arith.constant 0 : i32
    %c0_i32_0 = arith.constant 0 : i32
    return %c0_i32 : i32
  }
  func.func @transform_1(%arg0: i32, %arg1: i32) -> (i32, i32) {
    %c0_i32 = arith.constant 0 : i32
    %c0_i32_0 = arith.constant 0 : i32
    return %arg0, %c0_i32 : i32, i32
  }
  func.func @transform_2(%arg0: i32, %arg1: i32) -> (i32, i32) {
    %c0_i32 = arith.constant 0 : i32
    %c0_i32_0 = arith.constant 0 : i32
    return %c0_i32, %arg1 : i32, i32
  }
  func.func @transform_3(%arg0: i32, %arg1: i32) -> (i32, i32) {
    %c0_i32 = arith.constant 0 : i32
    %c0_i32_0 = arith.constant 0 : i32
    return %arg0, %c0_i32 : i32, i32
  }
  func.func @transform_4(%arg0: i32, %arg1: i32) -> (i32, i32) {
    %c0_i32 = arith.constant 0 : i32
    %c0_i32_0 = arith.constant 0 : i32
    return %arg1, %c0_i32 : i32, i32
  }
  func.func @transform_5(%arg0: i32, %arg1: i32) -> (i32, i32) {
    %c0_i32 = arith.constant 0 : i32
    return %arg0, %arg1 : i32, i32
  }
}

</mosaic_0001>

<bundles_post_ra>
// kernel: _cosine_linear_padded.1
= control target key start
LH: loop header
LB: loop body
LE: loop exit
PB: predicated region body
PF: predicated region fallthrough
CT: control target
= control target key end

     0   :  { %v220_v0 = vmov 0.0   ;;  %vm221_vm0 = vmmov 0   ;;  %v222_v2 = vmov 0   ;;  %s298_s4 = inlined_call_operand.vmem [shape: bf16[128,128], index: 4, kind: input, shape index: {}]   ;;  %s299_s1 = inlined_call_operand.vmem [shape: f32[16,1], index: 1, kind: input, shape index: {}]   ;;  %s300_s3 = inlined_call_operand.vmem [shape: bf16[16,128], index: 3, kind: input, shape index: {}]   ;;  %s301_s2 = inlined_call_operand.vmem [shape: f32[1,128], index: 2, kind: input, shape index: {}]   ;;  %s302_s0 = inlined_call_operand.<no memory space> [shape: f32[1], index: 0, kind: input, shape index: {}]   ;;  %s303_s5 = inlined_call_operand.vmem [shape: f32[16,128], index: 5, kind: output, shape index: {}]  }
   0x1   :  { %187 = vmatprep.subr.bf16.mxu0 %v220_v0  ;;  %v211_v1 = vld [vmem:[%s298_s4 + $0x38] sm:$0xff]   ;;  %203 = vmatprep.mubr.msk.bf16.mxu0 %vm221_vm0, %v220_v0  ;;  %v212_v3 = vld [vmem:[%s298_s4 + $0x30] sm:$0xff]   ;;  %v135_v4 = vld [vmem:[%s299_s1] sm:$0xff]  ;;  %v159_v17 = vstv %s302_s0 }
   0x2   :  { %210 = vset.pattern.permute.xlu0 %v222_v2  ;;  %188 = vmatpush3.bf16.xpose.msra.mxu0 %v211_v1  ;;  %v136_v5 = vld [vmem:[%s299_s1 + $0x8] sm:$0xff]  ;;  %v214_v7 = vld [vmem:[%s298_s4 + $0x20] sm:$0xff]   ;;  %v215_v8 = vld [vmem:[%s298_s4 + $0x18] sm:$0xff]  }
   0x3   :  { %189 = vmatprep.subr.bf16.mxu0 %v220_v0  ;;  %141 = vperm.xlu0 %210, %v135_v4   ;;  %v213_v6 = vld [vmem:[%s298_s4 + $0x28] sm:$0xff]   ;;  %v216_v9 = vld [vmem:[%s298_s4 + $0x10] sm:$0xff]   ;;  %v218_v11 = vld [vmem:[%s298_s4] sm:$0xff]  }
   0x4   :  { %v217_v10 = vld [vmem:[%s298_s4 + $0x8] sm:$0xff]   ;;  %v219_v12 = vld [vmem:[%s300_s3] sm:$0xff]  }
   0x5   :  { %v177_v15 = vld [vmem:[%s301_s2] ss:$0 sm:$0xff] }
   0x7   :  { %146 = vperm.xlu0 %210, %v136_v5  }
   0xa   :  { %190 = vmatpush3.bf16.xpose.msra.mxu0 %v212_v3 }
   0xb   :  { %191 = vmatprep.subr.bf16.mxu0 %v220_v0 }
  0x12   :  { %192 = vmatpush3.bf16.xpose.msra.mxu0 %v213_v6 }
  0x13   :  { %193 = vmatprep.subr.bf16.mxu0 %v220_v0 }
  0x1a   :  { %194 = vmatpush3.bf16.xpose.msra.mxu0 %v214_v7 }
  0x1b   :  { %195 = vmatprep.subr.bf16.mxu0 %v220_v0 }
  0x22   :  { %196 = vmatpush3.bf16.xpose.msra.mxu0 %v215_v8 }
  0x23   :  { %197 = vmatprep.subr.bf16.mxu0 %v220_v0 }
  0x2a   :  { %198 = vmatpush3.bf16.xpose.msra.mxu0 %v216_v9 }
  0x2b   :  { %199 = vmatprep.subr.bf16.mxu0 %v220_v0 }
  0x32   :  { %200 = vmatpush3.bf16.xpose.msra.mxu0 %v217_v10 }
  0x33   :  { %201 = vmatprep.subr.bf16.mxu0 %v220_v0 }
  0x3a   :  { %202 = vmatpush3.bf16.xpose.msra.mxu0 %v218_v11 }
  0x41   :  { %204 = vmatmul.mubr.bf16.vlgmr.msra.gmra.mxu0 %v219_v12 }
  0x7e   :  { %v142_v13 = vpop.permute.xlu0 %141 }
  0x82   :  { %v147_v20 = vpop.permute.xlu0 %146 }
 0x101   :  { %v128_v14 = vpop.f32.mrf.mxu0 }
 0x102   :  { %v149_v16 = vmul.f32 %v142_v13, %v128_v14 }
 0x103   :  { %v205_v18 = vpop.f32.mrf.mxu0 }
 0x104   :  { %v157_v19 = vmul.f32 %v177_v15, %v149_v16 }
 0x105   :  { %v131_v21 = vpop.f32.mrf.mxu0 }
 0x106   :  { %v160_v22 = vmul.f32 %v159_v17, %v157_v19  ;;  %v150_v23 = vmul.f32 %v147_v20, %v131_v21 }
 0x107   :  { %v206_v24 = vpop.f32.mrf.mxu0 }
 0x108   :  { %162 = vst [vmem:[%s303_s5] sm:$0xff] %v160_v22  ;;  %v158_v25 = vmul.f32 %v177_v15, %v150_v23 }
 0x10a   :  { %v161_v26 = vmul.f32 %v159_v17, %v158_v25 }
 0x10c   :  { %163 = vst [vmem:[%s303_s5 + $0x8] sm:$0xff] %v161_v26 }

</bundles_post_ra>
